<compile_context>
chip_gen: v7x
topology: tpu7x:2x2x1
jax: 0.10.0
libtpu: 0.0.40
codegen_flags: <defaults>
</compile_context>

<pallas_src>
import functools

import jax
import jax.numpy as jnp
from jax.experimental import pallas as pl
from jax.experimental.pallas import tpu as pltpu


def _spatial_attention_kernel(x_ref, wall_ref, wo_ref, out_ref,
                              theta_s, phi_s, g_s, *,
                              HW, C, TQ, CH, bf16_softmax):
    C8 = C // 8
    C2 = C // 2
    HW4 = HW // 4
    qt = pl.program_id(1)

    # ---- once per image: fused [g | phi | theta] projection; 2x2 max-pool of
    # the g/phi columns; theta stashed.  All into persistent VMEM scratch. ----
    @pl.when(qt == 0)
    def _():
        nchunks = HW4 // CH

        def do_chunk(r0, p0, first):
            rows = x_ref[pl.ds(r0, CH), :]                           # (CH, C) bf16
            proj = jnp.dot(rows, wall_ref[...],
                           preferred_element_type=jnp.float32)       # (CH, C2+2*C8)
            g_p = proj[:, :C2].astype(jnp.bfloat16)
            phi_p = proj[:, C2:C2 + C8].astype(jnp.bfloat16)
            theta_s[pl.ds(r0, CH), :] = proj[:, C2 + C8:].astype(jnp.bfloat16)
            if first:                                                # pool group 0: init
                g_s[pl.ds(p0, CH), :] = g_p
                phi_s[pl.ds(p0, CH), :] = phi_p
            else:                                                    # groups 1..3: max
                g_s[pl.ds(p0, CH), :] = jnp.maximum(g_s[pl.ds(p0, CH), :], g_p)
                phi_s[pl.ds(p0, CH), :] = jnp.maximum(phi_s[pl.ds(p0, CH), :], phi_p)

        for k in range(4):                        # static loop over 2x2 pool groups
            if nchunks == 1:
                do_chunk(k * HW4, 0, k == 0)
            else:
                @pl.loop(0, nchunks)
                def _(c, _k=k):
                    p0 = pl.multiple_of(c * CH, CH)
                    do_chunk(_k * HW4 + p0, p0, _k == 0)

    # ---- per query tile: scores -> softmax (deferred norm) -> values -> out.
    q0 = pl.multiple_of(qt * TQ, TQ)
    theta = theta_s[pl.ds(q0, TQ), :]                                # (TQ, C8) bf16
    s = jax.lax.dot_general(theta, phi_s[...], (((1,), (1,)), ((), ())),
                            preferred_element_type=jnp.float32)      # (TQ, HW4)
    m = jnp.max(s, axis=-1, keepdims=True)
    if bf16_softmax:                                                  # bf16 EUP (v6e/v7x)
        e = jnp.exp((s - m).astype(jnp.bfloat16))
        l = jnp.sum(e, axis=-1, keepdims=True, dtype=jnp.float32)
    else:                                                             # v5e: f32 exp
        e32 = jnp.exp(s - m)
        l = jnp.sum(e32, axis=-1, keepdims=True)
        e = e32.astype(jnp.bfloat16)
    o = jnp.dot(e, g_s[...], preferred_element_type=jnp.float32)     # (TQ, C2)
    o = (o * pl.reciprocal(l, approx=True)).astype(jnp.bfloat16)     # deferred softmax norm
    o = jnp.dot(o, wo_ref[...], preferred_element_type=jnp.float32)  # (TQ, C); gamma folded
    # Late reload of the x tile for the residual (not kept live across matmuls).
    out_ref[...] = o + x_ref[pl.ds(q0, TQ), :].astype(jnp.float32)


def _pick_tile(n, cap, preferred=(256, 128, 8)):
    """Largest divisor of n that is <= cap and a multiple of one of the
    preferred alignments (tried in order); falls back to n (one full tile)."""
    cap = max(1, min(n, cap))
    for m in preferred:
        best = 0
        d = m
        while d <= cap:
            if n % d == 0:
                best = d
            d += m
        if best:
            return best
    return n


def spatial_attention(x_nchw, w_theta, w_phi, w_g, w_o, gamma, *,
                      max_tq=512, bf16_softmax=True):
    """x_nchw: (N, C, H, W).  Conv weights are PyTorch 1x1-conv weights with the
    trailing (1, 1) squeezed: w_theta/w_phi (C/8, C), w_g (C/2, C), w_o (C, C/2).
    Set bf16_softmax=False on v5e (no bf16 EUP/VPU)."""
    N, C, H, W = x_nchw.shape
    assert C % 8 == 0 and H % 2 == 0 and W % 2 == 0, (C, H, W)
    HW = H * W
    H2, W2 = H // 2, W // 2
    HW4 = HW // 4
    C8, C2 = C // 8, C // 2
    Ct = C2 + 2 * C8

    TQ = _pick_tile(HW, max_tq)                       # query-tile rows (MXU-aligned)
    CH = _pick_tile(HW4, 256, preferred=(8,))         # pooled-row chunk for qt == 0

    # Pool-group-major layout: flat index = (dh*2+dw)*HW/4 + h2*W2 + w2, so the
    # 2x2 max-pool is an elementwise max over 4 static row blocks.  bf16 halves
    # HBM read traffic and the resident per-image block.
    x_re = jnp.transpose(
        x_nchw.reshape(N, C, H2, 2, W2, 2), (0, 3, 5, 2, 4, 1)
    ).reshape(N, HW, C).astype(jnp.bfloat16)

    # Fused projection weight, columns ordered [g | phi | theta] so the widest
    # slice (g) starts at lane 0 and phi / theta start at C/2 and 5C/8.
    w_all = jnp.transpose(
        jnp.concatenate([w_g, w_phi, w_theta], axis=0)).astype(jnp.bfloat16)   # (C, Ct)
    # gamma folded into the output projection (drops an operand + a VPU mul).
    wo = (jnp.float32(gamma) * jnp.transpose(w_o)).astype(jnp.bfloat16)         # (C2, C)

    flops = N * 2 * (HW * C * Ct + HW * HW4 * (C8 + C2) + HW * C2 * C)
    cost = pl.CostEstimate(
        flops=int(flops),
        transcendentals=int(N * HW * HW4),
        bytes_accessed=int(N * HW * C * (2 + 4) + (C * Ct + C2 * C) * 2),
    )

    # Rough VMEM footprint (double-buffered x/out blocks, weights, scratch,
    # live intermediates); cap below physical capacity with headroom.
    est_vmem = (2 * HW * C * 2 + 2 * TQ * C * 4 + 2 * (C * Ct + C2 * C) * 2
                + HW * C8 * 2 + HW4 * (C8 + C2) * 2
                + CH * Ct * 4 + 4 * TQ * HW4 * 4)
    try:
        vmem_cap = int(pltpu.get_tpu_info().vmem_capacity_bytes)
    except Exception:
        vmem_cap = 64 * 1024 * 1024
    vmem_limit = int(min(vmem_cap - 8 * 1024 * 1024,
                         max(32 * 1024 * 1024, 2 * est_vmem)))

    kernel = functools.partial(_spatial_attention_kernel, HW=HW, C=C, TQ=TQ,
                               CH=CH, bf16_softmax=bf16_softmax)
    out_flat = pl.pallas_call(
        kernel,
        out_shape=jax.ShapeDtypeStruct((N, HW, C), jnp.float32),
        grid=(N, HW // TQ),
        in_specs=[
            pl.BlockSpec((None, HW, C), lambda n, q: (n, 0, 0)),   # x: per-image resident
            pl.BlockSpec((C, Ct), lambda n, q: (0, 0)),            # fused [g|phi|theta]
            pl.BlockSpec((C2, C), lambda n, q: (0, 0)),            # w_o (gamma folded)
        ],
        out_specs=pl.BlockSpec((None, TQ, C), lambda n, q: (n, q, 0)),
        scratch_shapes=[
            pltpu.VMEM((HW, C8), jnp.bfloat16),                    # theta
            pltpu.VMEM((HW4, C8), jnp.bfloat16),                   # pooled phi
            pltpu.VMEM((HW4, C2), jnp.bfloat16),                   # pooled g
        ],
        compiler_params=pltpu.CompilerParams(
            dimension_semantics=("parallel", "arbitrary"),
            vmem_limit_bytes=vmem_limit,
        ),
        cost_estimate=cost,
    )(x_re, w_all, wo)

    # Undo the spatial permutation: (N, HW, C) -> (N, C, H, W).
    out = jnp.transpose(
        out_flat.reshape(N, 2, 2, H2, W2, C), (0, 5, 3, 1, 4, 2)
    ).reshape(N, C, H, W)
    return out


def ref_spatial_attention(x, w_theta, w_phi, w_g, w_o, gamma):
    """Pure-JAX f32 reference matching the PyTorch forward exactly (NCHW)."""
    N, C, H, W = x.shape
    conv = lambda t, w: jnp.einsum('nchw,dc->ndhw', t, w)

    def pool(t):
        n, d, h, w = t.shape
        return jnp.max(t.reshape(n, d, h // 2, 2, w // 2, 2), axis=(3, 5))

    theta = conv(x, w_theta).reshape(N, C // 8, H * W)
    phi = pool(conv(x, w_phi)).reshape(N, C // 8, H * W // 4)
    g = pool(conv(x, w_g)).reshape(N, C // 2, H * W // 4)
    beta = jax.nn.softmax(jnp.einsum('nki,nkj->nij', theta, phi), axis=-1)
    o = jnp.einsum('ncj,nij->nci', g, beta).reshape(N, C // 2, H, W)
    o = conv(o, w_o)
    return gamma * o + x


if __name__ == "__main__":
    key = jax.random.PRNGKey(0)
    N, C, H, W = 2, 32, 16, 16   # ch must be divisible by 8
    kx, kt, kp, kg, ko = jax.random.split(key, 5)

    x = jax.random.normal(kx, (N, C, H, W), jnp.float32)
    w_theta = 0.1 * jax.random.normal(kt, (C // 8, C), jnp.float32)  # Conv2d(ch, ch//8, 1)
    w_phi = 0.1 * jax.random.normal(kp, (C // 8, C), jnp.float32)    # Conv2d(ch, ch//8, 1)
    w_g = 0.1 * jax.random.normal(kg, (C // 2, C), jnp.float32)      # Conv2d(ch, ch//2, 1)
    w_o = 0.1 * jax.random.normal(ko, (C, C // 2), jnp.float32)      # Conv2d(ch//2, ch, 1)
    # Module inits gamma to 0.0 (output == x); use a nonzero value so the
    # attention branch actually contributes and gets verified.
    gamma = 0.5

    # max_tq=64 -> 4 query tiles per image: exercises the tiled/scratch-reuse path.
    out = jax.block_until_ready(
        spatial_attention(x, w_theta, w_phi, w_g, w_o, gamma, max_tq=64))
    ref = ref_spatial_attention(x, w_theta, w_phi, w_g, w_o, gamma)

    assert out.shape == x.shape, (out.shape, x.shape)
    max_err = float(jnp.max(jnp.abs(out - ref)))
    # bf16 x / MXU operands / softmax + approx reciprocal: relax the f32 tolerance.
    assert jnp.allclose(out, ref, atol=3e-2, rtol=3e-2), f"max abs err = {max_err}"
    print("KERNEL_OK")
</pallas_src>

<mosaic_0001>
module attributes {stable_mosaic.version = 11 : i64} {
  func.func @_spatial_attention_kernel(%arg0: i32, %arg1: i32, %arg2: memref<1x256x32xbf16, #tpu.memory_space<vmem>>, %arg3: memref<32x24xbf16, #tpu.memory_space<vmem>>, %arg4: memref<16x32xbf16, #tpu.memory_space<vmem>>, %arg5: memref<1x64x32xf32, #tpu.memory_space<vmem>>, %arg6: memref<256x4xbf16, #tpu.memory_space<vmem>>, %arg7: memref<64x4xbf16, #tpu.memory_space<vmem>>, %arg8: memref<64x16xbf16, #tpu.memory_space<vmem>>) attributes {dimension_semantics = [#tpu.dimension_semantics<parallel>, #tpu.dimension_semantics<arbitrary>], iteration_bounds = array<i64: 2, 4>, scalar_prefetch = 0 : i64, scratch_operands = 3 : i64, tpu.core_type = #tpu.core_type<tc>, window_params = [{transform_indices = @transform_0, window_bounds = array<i64: 1, 256, 32>}, {pipeline_mode = #tpu.pipeline_mode<synchronous>, transform_indices = @transform_1, window_bounds = array<i64: 32, 24>}, {pipeline_mode = #tpu.pipeline_mode<synchronous>, transform_indices = @transform_2, window_bounds = array<i64: 16, 32>}, {transform_indices = @transform_3, window_bounds = array<i64: 1, 64, 32>}]} {
    %c0_i32 = arith.constant 0 : i32
    %0 = arith.cmpi eq, %arg1, %c0_i32 : i32
    %1 = arith.extui %0 : i1 to i32
    %c0_i32_0 = arith.constant 0 : i32
    %2 = arith.cmpi ne, %1, %c0_i32_0 : i32
    scf.if %2 {
      %c0_16 = arith.constant 0 : index
      %c0_17 = arith.constant 0 : index
      %c0_18 = arith.constant 0 : index
      %34 = vector.load %arg2[%c0_16, %c0_17, %c0_18] : memref<1x256x32xbf16, #tpu.memory_space<vmem>>, vector<1x64x32xbf16>
      %35 = vector.shape_cast %34 : vector<1x64x32xbf16> to vector<64x32xbf16>
      %c0_19 = arith.constant 0 : index
      %c0_20 = arith.constant 0 : index
      %36 = vector.load %arg3[%c0_19, %c0_20] : memref<32x24xbf16, #tpu.memory_space<vmem>>, vector<32x24xbf16>
      %cst_21 = arith.constant dense<0.000000e+00> : vector<64x24xf32>
      %37 = tpu.matmul %35, %36, %cst_21 {dimension_numbers = #tpu.dot_dimension_numbers<[1], [0], [0], [1], [0, 0, 1, 1], [], []>} : vector<64x32xbf16>, vector<32x24xbf16>, vector<64x24xf32> -> vector<64x24xf32>
      %38 = vector.extract_strided_slice %37 {offsets = [0, 0], sizes = [64, 16], strides = [1, 1]} : vector<64x24xf32> to vector<64x16xf32>
      %39 = arith.truncf %38 : vector<64x16xf32> to vector<64x16xbf16>
      %40 = vector.extract_strided_slice %37 {offsets = [0, 16], sizes = [64, 4], strides = [1, 1]} : vector<64x24xf32> to vector<64x4xf32>
      %41 = arith.truncf %40 : vector<64x4xf32> to vector<64x4xbf16>
      %42 = vector.extract_strided_slice %37 {offsets = [0, 20], sizes = [64, 4], strides = [1, 1]} : vector<64x24xf32> to vector<64x4xf32>
      %43 = arith.truncf %42 : vector<64x4xf32> to vector<64x4xbf16>
      %c0_22 = arith.constant 0 : index
      %c0_23 = arith.constant 0 : index
      %44 = vector.load %arg6[%c0_22, %c0_23] : memref<256x4xbf16, #tpu.memory_space<vmem>>, vector<64x4xbf16>
      tpu.vector_store %arg6[%c0_22, %c0_23], %43 {strides = array<i32>} : memref<256x4xbf16, #tpu.memory_space<vmem>>, vector<64x4xbf16>,
      %c0_24 = arith.constant 0 : index
      %c0_25 = arith.constant 0 : index
      %45 = vector.load %arg8[%c0_24, %c0_25] : memref<64x16xbf16, #tpu.memory_space<vmem>>, vector<64x16xbf16>
      tpu.vector_store %arg8[%c0_24, %c0_25], %39 {strides = array<i32>} : memref<64x16xbf16, #tpu.memory_space<vmem>>, vector<64x16xbf16>,
      %c0_26 = arith.constant 0 : index
      %c0_27 = arith.constant 0 : index
      %46 = vector.load %arg7[%c0_26, %c0_27] : memref<64x4xbf16, #tpu.memory_space<vmem>>, vector<64x4xbf16>
      tpu.vector_store %arg7[%c0_26, %c0_27], %41 {strides = array<i32>} : memref<64x4xbf16, #tpu.memory_space<vmem>>, vector<64x4xbf16>,
      %c0_28 = arith.constant 0 : index
      %c64 = arith.constant 64 : index
      %c0_29 = arith.constant 0 : index
      %47 = vector.load %arg2[%c0_28, %c64, %c0_29] : memref<1x256x32xbf16, #tpu.memory_space<vmem>>, vector<1x64x32xbf16>
      %48 = vector.shape_cast %47 : vector<1x64x32xbf16> to vector<64x32xbf16>
      %c0_30 = arith.constant 0 : index
      %c0_31 = arith.constant 0 : index
      %49 = vector.load %arg3[%c0_30, %c0_31] : memref<32x24xbf16, #tpu.memory_space<vmem>>, vector<32x24xbf16>
      %cst_32 = arith.constant dense<0.000000e+00> : vector<64x24xf32>
      %50 = tpu.matmul %48, %49, %cst_32 {dimension_numbers = #tpu.dot_dimension_numbers<[1], [0], [0], [1], [0, 0, 1, 1], [], []>} : vector<64x32xbf16>, vector<32x24xbf16>, vector<64x24xf32> -> vector<64x24xf32>
      %51 = vector.extract_strided_slice %50 {offsets = [0, 0], sizes = [64, 16], strides = [1, 1]} : vector<64x24xf32> to vector<64x16xf32>
      %52 = arith.truncf %51 : vector<64x16xf32> to vector<64x16xbf16>
      %53 = vector.extract_strided_slice %50 {offsets = [0, 16], sizes = [64, 4], strides = [1, 1]} : vector<64x24xf32> to vector<64x4xf32>
      %54 = arith.truncf %53 : vector<64x4xf32> to vector<64x4xbf16>
      %55 = vector.extract_strided_slice %50 {offsets = [0, 20], sizes = [64, 4], strides = [1, 1]} : vector<64x24xf32> to vector<64x4xf32>
      %56 = arith.truncf %55 : vector<64x4xf32> to vector<64x4xbf16>
      %c64_33 = arith.constant 64 : index
      %c0_34 = arith.constant 0 : index
      %57 = vector.load %arg6[%c64_33, %c0_34] : memref<256x4xbf16, #tpu.memory_space<vmem>>, vector<64x4xbf16>
      tpu.vector_store %arg6[%c64_33, %c0_34], %56 {strides = array<i32>} : memref<256x4xbf16, #tpu.memory_space<vmem>>, vector<64x4xbf16>,
      %c0_35 = arith.constant 0 : index
      %c0_36 = arith.constant 0 : index
      %58 = vector.load %arg8[%c0_35, %c0_36] : memref<64x16xbf16, #tpu.memory_space<vmem>>, vector<64x16xbf16>
      %59 = arith.maximumf %58, %52 : vector<64x16xbf16>
      %c0_37 = arith.constant 0 : index
      %c0_38 = arith.constant 0 : index
      %60 = vector.load %arg8[%c0_37, %c0_38] : memref<64x16xbf16, #tpu.memory_space<vmem>>, vector<64x16xbf16>
      tpu.vector_store %arg8[%c0_37, %c0_38], %59 {strides = array<i32>} : memref<64x16xbf16, #tpu.memory_space<vmem>>, vector<64x16xbf16>,
      %c0_39 = arith.constant 0 : index
      %c0_40 = arith.constant 0 : index
      %61 = vector.load %arg7[%c0_39, %c0_40] : memref<64x4xbf16, #tpu.memory_space<vmem>>, vector<64x4xbf16>
      %62 = arith.maximumf %61, %54 : vector<64x4xbf16>
      %c0_41 = arith.constant 0 : index
      %c0_42 = arith.constant 0 : index
      %63 = vector.load %arg7[%c0_41, %c0_42] : memref<64x4xbf16, #tpu.memory_space<vmem>>, vector<64x4xbf16>
      tpu.vector_store %arg7[%c0_41, %c0_42], %62 {strides = array<i32>} : memref<64x4xbf16, #tpu.memory_space<vmem>>, vector<64x4xbf16>,
      %c0_43 = arith.constant 0 : index
      %c128 = arith.constant 128 : index
      %c0_44 = arith.constant 0 : index
      %64 = vector.load %arg2[%c0_43, %c128, %c0_44] : memref<1x256x32xbf16, #tpu.memory_space<vmem>>, vector<1x64x32xbf16>
      %65 = vector.shape_cast %64 : vector<1x64x32xbf16> to vector<64x32xbf16>
      %c0_45 = arith.constant 0 : index
      %c0_46 = arith.constant 0 : index
      %66 = vector.load %arg3[%c0_45, %c0_46] : memref<32x24xbf16, #tpu.memory_space<vmem>>, vector<32x24xbf16>
      %cst_47 = arith.constant dense<0.000000e+00> : vector<64x24xf32>
      %67 = tpu.matmul %65, %66, %cst_47 {dimension_numbers = #tpu.dot_dimension_numbers<[1], [0], [0], [1], [0, 0, 1, 1], [], []>} : vector<64x32xbf16>, vector<32x24xbf16>, vector<64x24xf32> -> vector<64x24xf32>
      %68 = vector.extract_strided_slice %67 {offsets = [0, 0], sizes = [64, 16], strides = [1, 1]} : vector<64x24xf32> to vector<64x16xf32>
      %69 = arith.truncf %68 : vector<64x16xf32> to vector<64x16xbf16>
      %70 = vector.extract_strided_slice %67 {offsets = [0, 16], sizes = [64, 4], strides = [1, 1]} : vector<64x24xf32> to vector<64x4xf32>
      %71 = arith.truncf %70 : vector<64x4xf32> to vector<64x4xbf16>
      %72 = vector.extract_strided_slice %67 {offsets = [0, 20], sizes = [64, 4], strides = [1, 1]} : vector<64x24xf32> to vector<64x4xf32>
      %73 = arith.truncf %72 : vector<64x4xf32> to vector<64x4xbf16>
      %c128_48 = arith.constant 128 : index
      %c0_49 = arith.constant 0 : index
      %74 = vector.load %arg6[%c128_48, %c0_49] : memref<256x4xbf16, #tpu.memory_space<vmem>>, vector<64x4xbf16>
      tpu.vector_store %arg6[%c128_48, %c0_49], %73 {strides = array<i32>} : memref<256x4xbf16, #tpu.memory_space<vmem>>, vector<64x4xbf16>,
      %c0_50 = arith.constant 0 : index
      %c0_51 = arith.constant 0 : index
      %75 = vector.load %arg8[%c0_50, %c0_51] : memref<64x16xbf16, #tpu.memory_space<vmem>>, vector<64x16xbf16>
      %76 = arith.maximumf %75, %69 : vector<64x16xbf16>
      %c0_52 = arith.constant 0 : index
      %c0_53 = arith.constant 0 : index
      %77 = vector.load %arg8[%c0_52, %c0_53] : memref<64x16xbf16, #tpu.memory_space<vmem>>, vector<64x16xbf16>
      tpu.vector_store %arg8[%c0_52, %c0_53], %76 {strides = array<i32>} : memref<64x16xbf16, #tpu.memory_space<vmem>>, vector<64x16xbf16>,
      %c0_54 = arith.constant 0 : index
      %c0_55 = arith.constant 0 : index
      %78 = vector.load %arg7[%c0_54, %c0_55] : memref<64x4xbf16, #tpu.memory_space<vmem>>, vector<64x4xbf16>
      %79 = arith.maximumf %78, %71 : vector<64x4xbf16>
      %c0_56 = arith.constant 0 : index
      %c0_57 = arith.constant 0 : index
      %80 = vector.load %arg7[%c0_56, %c0_57] : memref<64x4xbf16, #tpu.memory_space<vmem>>, vector<64x4xbf16>
      tpu.vector_store %arg7[%c0_56, %c0_57], %79 {strides = array<i32>} : memref<64x4xbf16, #tpu.memory_space<vmem>>, vector<64x4xbf16>,
      %c0_58 = arith.constant 0 : index
      %c192 = arith.constant 192 : index
      %c0_59 = arith.constant 0 : index
      %81 = vector.load %arg2[%c0_58, %c192, %c0_59] : memref<1x256x32xbf16, #tpu.memory_space<vmem>>, vector<1x64x32xbf16>
      %82 = vector.shape_cast %81 : vector<1x64x32xbf16> to vector<64x32xbf16>
      %c0_60 = arith.constant 0 : index
      %c0_61 = arith.constant 0 : index
      %83 = vector.load %arg3[%c0_60, %c0_61] : memref<32x24xbf16, #tpu.memory_space<vmem>>, vector<32x24xbf16>
      %cst_62 = arith.constant dense<0.000000e+00> : vector<64x24xf32>
      %84 = tpu.matmul %82, %83, %cst_62 {dimension_numbers = #tpu.dot_dimension_numbers<[1], [0], [0], [1], [0, 0, 1, 1], [], []>} : vector<64x32xbf16>, vector<32x24xbf16>, vector<64x24xf32> -> vector<64x24xf32>
      %85 = vector.extract_strided_slice %84 {offsets = [0, 0], sizes = [64, 16], strides = [1, 1]} : vector<64x24xf32> to vector<64x16xf32>
      %86 = arith.truncf %85 : vector<64x16xf32> to vector<64x16xbf16>
      %87 = vector.extract_strided_slice %84 {offsets = [0, 16], sizes = [64, 4], strides = [1, 1]} : vector<64x24xf32> to vector<64x4xf32>
      %88 = arith.truncf %87 : vector<64x4xf32> to vector<64x4xbf16>
      %89 = vector.extract_strided_slice %84 {offsets = [0, 20], sizes = [64, 4], strides = [1, 1]} : vector<64x24xf32> to vector<64x4xf32>
      %90 = arith.truncf %89 : vector<64x4xf32> to vector<64x4xbf16>
      %c192_63 = arith.constant 192 : index
      %c0_64 = arith.constant 0 : index
      %91 = vector.load %arg6[%c192_63, %c0_64] : memref<256x4xbf16, #tpu.memory_space<vmem>>, vector<64x4xbf16>
      tpu.vector_store %arg6[%c192_63, %c0_64], %90 {strides = array<i32>} : memref<256x4xbf16, #tpu.memory_space<vmem>>, vector<64x4xbf16>,
      %c0_65 = arith.constant 0 : index
      %c0_66 = arith.constant 0 : index
      %92 = vector.load %arg8[%c0_65, %c0_66] : memref<64x16xbf16, #tpu.memory_space<vmem>>, vector<64x16xbf16>
      %93 = arith.maximumf %92, %86 : vector<64x16xbf16>
      %c0_67 = arith.constant 0 : index
      %c0_68 = arith.constant 0 : index
      %94 = vector.load %arg8[%c0_67, %c0_68] : memref<64x16xbf16, #tpu.memory_space<vmem>>, vector<64x16xbf16>
      tpu.vector_store %arg8[%c0_67, %c0_68], %93 {strides = array<i32>} : memref<64x16xbf16, #tpu.memory_space<vmem>>, vector<64x16xbf16>,
      %c0_69 = arith.constant 0 : index
      %c0_70 = arith.constant 0 : index
      %95 = vector.load %arg7[%c0_69, %c0_70] : memref<64x4xbf16, #tpu.memory_space<vmem>>, vector<64x4xbf16>
      %96 = arith.maximumf %95, %88 : vector<64x4xbf16>
      %c0_71 = arith.constant 0 : index
      %c0_72 = arith.constant 0 : index
      %97 = vector.load %arg7[%c0_71, %c0_72] : memref<64x4xbf16, #tpu.memory_space<vmem>>, vector<64x4xbf16>
      tpu.vector_store %arg7[%c0_71, %c0_72], %96 {strides = array<i32>} : memref<64x4xbf16, #tpu.memory_space<vmem>>, vector<64x4xbf16>,
    } else {
    }
    %c64_i32 = arith.constant 64 : i32
    %3 = arith.muli %arg1, %c64_i32 : i32
    %4 = tpu.assume_multiple %3, 64 : i32
    %5 = arith.index_cast %4 : i32 to index
    %c0 = arith.constant 0 : index
    %6 = vector.load %arg6[%5, %c0] : memref<256x4xbf16, #tpu.memory_space<vmem>>, vector<64x4xbf16>
    %c0_1 = arith.constant 0 : index
    %c0_2 = arith.constant 0 : index
    %7 = vector.load %arg7[%c0_1, %c0_2] : memref<64x4xbf16, #tpu.memory_space<vmem>>, vector<64x4xbf16>
    %cst = arith.constant dense<0.000000e+00> : vector<64x64xf32>
    %8 = tpu.matmul %6, %7, %cst {dimension_numbers = #tpu.dot_dimension_numbers<[1], [1], [0], [0], [0, 0, 1, 0], [], []>} : vector<64x4xbf16>, vector<64x4xbf16>, vector<64x64xf32> -> vector<64x64xf32>
    %cst_3 = arith.constant dense<0xFF800000> : vector<64xf32>
    %9 = vector.multi_reduction <maximumf>, %8, %cst_3 [1] : vector<64x64xf32> to vector<64xf32>
    %10 = vector.shape_cast %9 : vector<64xf32> to vector<64x1xf32>
    %11 = vector.broadcast %10 : vector<64x1xf32> to vector<64x64xf32>
    %12 = arith.subf %8, %11 : vector<64x64xf32>
    %13 = arith.truncf %12 : vector<64x64xf32> to vector<64x64xbf16>
    %14 = math.exp %13 : vector<64x64xbf16>
    %15 = arith.extf %14 : vector<64x64xbf16> to vector<64x64xf32>
    %cst_4 = arith.constant dense<0.000000e+00> : vector<64xf32>
    %16 = vector.multi_reduction <add>, %15, %cst_4 [1] : vector<64x64xf32> to vector<64xf32>
    %17 = vector.shape_cast %16 : vector<64xf32> to vector<64x1xf32>
    %c0_5 = arith.constant 0 : index
    %c0_6 = arith.constant 0 : index
    %18 = vector.load %arg8[%c0_5, %c0_6] : memref<64x16xbf16, #tpu.memory_space<vmem>>, vector<64x16xbf16>
    %cst_7 = arith.constant dense<0.000000e+00> : vector<64x16xf32>
    %19 = tpu.matmul %14, %18, %cst_7 {dimension_numbers = #tpu.dot_dimension_numbers<[1], [0], [0], [1], [0, 0, 1, 1], [], []>} : vector<64x64xbf16>, vector<64x16xbf16>, vector<64x16xf32> -> vector<64x16xf32>
    %20 = tpu.reciprocal %17 {approx = true} : vector<64x1xf32> -> vector<64x1xf32>
    %21 = vector.broadcast %20 : vector<64x1xf32> to vector<64x16xf32>
    %22 = arith.mulf %19, %21 : vector<64x16xf32>
    %23 = arith.truncf %22 : vector<64x16xf32> to vector<64x16xbf16>
    %c0_8 = arith.constant 0 : index
    %c0_9 = arith.constant 0 : index
    %24 = vector.load %arg4[%c0_8, %c0_9] : memref<16x32xbf16, #tpu.memory_space<vmem>>, vector<16x32xbf16>
    %cst_10 = arith.constant dense<0.000000e+00> : vector<64x32xf32>
    %25 = tpu.matmul %23, %24, %cst_10 {dimension_numbers = #tpu.dot_dimension_numbers<[1], [0], [0], [1], [0, 0, 1, 1], [], []>} : vector<64x16xbf16>, vector<16x32xbf16>, vector<64x32xf32> -> vector<64x32xf32>
    %c0_11 = arith.constant 0 : index
    %26 = arith.index_cast %4 : i32 to index
    %c0_12 = arith.constant 0 : index
    %27 = vector.load %arg2[%c0_11, %26, %c0_12] : memref<1x256x32xbf16, #tpu.memory_space<vmem>>, vector<1x64x32xbf16>
    %28 = vector.shape_cast %27 : vector<1x64x32xbf16> to vector<64x32xbf16>
    %29 = arith.extf %28 : vector<64x32xbf16> to vector<64x32xf32>
    %30 = arith.addf %25, %29 : vector<64x32xf32>
    %c0_13 = arith.constant 0 : index
    %c0_14 = arith.constant 0 : index
    %c0_15 = arith.constant 0 : index
    %31 = vector.load %arg5[%c0_13, %c0_14, %c0_15] : memref<1x64x32xf32, #tpu.memory_space<vmem>>, vector<1x64x32xf32>
    %32 = vector.shape_cast %31 : vector<1x64x32xf32> to vector<64x32xf32>
    %33 = vector.shape_cast %30 : vector<64x32xf32> to vector<1x64x32xf32>
    tpu.vector_store %arg5[%c0_13, %c0_14, %c0_15], %33 {strides = array<i32>} : memref<1x64x32xf32, #tpu.memory_space<vmem>>, vector<1x64x32xf32>,
    return
  }
  func.func @transform_0(%arg0: i32, %arg1: i32) -> (i32, i32, i32) {
    %c0_i32 = arith.constant 0 : i32
    %c0_i32_0 = arith.constant 0 : i32
    %c0_i32_1 = arith.constant 0 : i32
    return %arg0, %c0_i32, %c0_i32_0 : i32, i32, i32
  }
  func.func @transform_1(%arg0: i32, %arg1: i32) -> (i32, i32) {
    %c0_i32 = arith.constant 0 : i32
    %c0_i32_0 = arith.constant 0 : i32
    %c0_i32_1 = arith.constant 0 : i32
    return %c0_i32, %c0_i32_0 : i32, i32
  }
  func.func @transform_2(%arg0: i32, %arg1: i32) -> (i32, i32) {
    %c0_i32 = arith.constant 0 : i32
    %c0_i32_0 = arith.constant 0 : i32
    %c0_i32_1 = arith.constant 0 : i32
    return %c0_i32, %c0_i32_0 : i32, i32
  }
  func.func @transform_3(%arg0: i32, %arg1: i32) -> (i32, i32, i32) {
    %c0_i32 = arith.constant 0 : i32
    %c0_i32_0 = arith.constant 0 : i32
    return %arg0, %arg1, %c0_i32 : i32, i32, i32
  }
}

</mosaic_0001>

<bundles_post_ra>
// kernel: tpu_custom_call.1
= control target key start
LH: loop header
LB: loop body
LE: loop exit
PB: predicated region body
PF: predicated region fallthrough
CT: control target
= control target key end

     0   :  { %s1779_s12 = smov 0   ;;  %s1781_s13 = smov 0   ;;  %s2040_s0 = inlined_call_operand.vmem [shape: bf16[2,256,32], index: 0, kind: input, shape index: {}]   ;;  %s2041_s1 = inlined_call_operand.vmem [shape: bf16[32,24], index: 1, kind: input, shape index: {}]   ;;  %s2042_s2 = inlined_call_operand.vmem [shape: bf16[16,32], index: 2, kind: input, shape index: {}]   ;;  %s2043_s3 = inlined_call_operand.vmem [shape: f32[2,256,32], index: 3, kind: output, shape index: {}]  }
   0x1   :  { %s1783_s14 = smov 0   ;;  %s1785_s15 = smov 0  }
   0x2   :  { %s1787_s16 = smov 0  }
   0x3 LB: > { %s22_s17 = sadd.s32 1, %s1747_s14  ;;  %s25_s18 = sadd.s32 1, %s1751_s15  ;;  %s1755_s16 = sphi %s1787_s16, %s13_s16   ;;  %s1751_s15 = sphi %s1785_s15, %s2047_s15   ;;  %s1747_s14 = sphi %s1783_s14, %s2046_s14   ;;  %s1743_s13 = sphi %s1781_s13, %s2045_s13   ;;  %s1739_s12 = sphi %s1779_s12, %s2044_s12  }
   0x4   : > { %p23_p0 = scmp.ge.s32.totalorder %s22_s17, 4  ;;  %p1402_p1 = scmp.ge.s32.totalorder %s1755_s16, 1 }
   0x5   : > { %p151_p2 = scmp.lt.s32.totalorder %s1755_s16, 9 }
   0x6   : > { %s2049_s17 = smov (%p23_p0, %s22_s17), 0  ;;  %s2051_s18 = smov (!%p23_p0, %s25_s18), %s1751_s15 }
   0x7   : > { %p152_p3 = pnand %p1402_p1, %p151_p2  ;;  %p27_p4 = scmp.ge.s32.totalorder %s2051_s18, 2 }
   0x8   : > { %p179_p5 = scmp.lt.s32.totalorder (!%p152_p3), %s1743_s13, 1  ;;  %s1405_s19 = sshll.u32 (!%p152_p3), %s1739_s12, 3 }
   0x9   : > { %s2053_s18 = smov (%p27_p4, %s2051_s18), 0  ;;  %155 = sbr.rel (%p152_p3) target bundleno = 1278 (0x4fe), region = 32 }
   0xa   : > { %p187_p6 = scmp.lt.s32.totalorder (!%p152_p3), %s1405_s19, 31  ;;  %p1408_p7 = scmp.ne.s32.totalorder (!%p152_p3), %s1739_s12, 0 }
  0x10   : > { %s2055_s13 = smov (!%p179_p5, %s1743_s13), 1  ;;  %s2057_s19 = smov (!%p187_p6, %s1405_s19), 31 }
  0x11   : > { %s1467_s20 = sshll.u32 %s2055_s13, 7  ;;  %s1406_s21 = sshll.u32 %s2055_s13, 5  ;;  %v1668_v0 = vld [vmem:[%s2041_s1] sm:$0xff] (!%p1408_p7)   ;;  %v1670_v2 = vld [vmem:[%s2041_s1 + $0x8] sm:$0xff] (!%p1408_p7)   ;;  %vm243_vm0 = vcmask (!%p1408_p7), 261120   ;;  %vm346_vm1 = vcmask (!%p1408_p7), 130048  }
  0x12   : > { %s1815_s24 = scalar_lea.vmem %s2040_s0, %s1467_s20  ;;  %s190_s25 = sadd.s32 %s1406_s21, %s2057_s19  ;;  %v1669_v1 = vld [vmem:[%s2041_s1] sm:$0xff] (!%p1408_p7)   ;;  %1532 = vmatprep.subr.bf16.mxu0 (!%p1408_p7), %v1668_v0  ;;  %v1671_v3 = vld [vmem:[%s2041_s1 + $0x8] sm:$0xff] (!%p1408_p7)   ;;  %vm341_vm2 = vcmask (!%p1408_p7), 31744  }
  0x13   : > { %s1407_s26 = sshll.u32 %s190_s25, 3  ;;  %198 = sbr.rel (%p1408_p7) target bundleno = 419 (0x1a3), region = 36  ;;  %1544 = vmatprep.subr.bf16.mxu1 (!%p1408_p7), %v1669_v1  ;;  %1533 = vmatpush3.bf16.msra.mxu0 (!%p1408_p7), %v1668_v0  ;;  %v1672_v4 = vld [vmem:[%s1815_s24] sm:$0xff] (!%p1408_p7)   ;;  %v1674_v6 = vld [vmem:[%s1815_s24 + $0x8] sm:$0xff] (!%p1408_p7)   ;;  %v1676_v8 = vld [vmem:[%s1815_s24 + $0x10] sm:$0xff] (!%p1408_p7)  }
  0x14   : > { %s1820_s29 = scalar_lea.vmem %s2043_s3, %s1407_s26  ;;  %1545 = vmatpush3.bf16.msra.mxu1 (!%p1408_p7), %v1669_v1  ;;  %1534 = vmatprep.subr.bf16.mxu0 (!%p1408_p7), %v1670_v2  ;;  %v1673_v5 = vld [vmem:[%s1815_s24 + $0x20] sm:$0xff] (!%p1408_p7)   ;;  %v1675_v7 = vld [vmem:[%s1815_s24 + $0x28] sm:$0xff] (!%p1408_p7)   ;;  %v1679_v10 = vld [vmem:[%s1815_s24 + $0x30] sm:$0xff] (!%p1408_p7)   ;;  %s1757_s26 = smov (!%p1408_p7), 112  }
  0x15   : > { %1546 = vmatprep.subr.bf16.mxu1 (!%p1408_p7), %v1671_v3  ;;  %1536 = vmatprep.mubr.msk.bf16.mxu0 (!%p1408_p7), %vm243_vm0, %v1672_v4  ;;  %v1678_v9 = vld [vmem:[%s2041_s1] sm:$0xff] (!%p1408_p7)   ;;  %v1677_v11 = vld [vmem:[%s1815_s24 + $0x18] sm:$0xff] (!%p1408_p7)   ;;  %v1681_v12 = vld [vmem:[%s2041_s1 + $0x8] sm:$0xff] (!%p1408_p7)   ;;  %s1758_s27 = smov (!%p1408_p7), 108  }
  0x16   : > { %1548 = vmatprep.mubr.msk.bf16.mxu1 (!%p1408_p7), %vm243_vm0, %v1673_v5  ;;  %v1680_v13 = vld [vmem:[%s1815_s24 + $0x38] sm:$0xff] (!%p1408_p7)   ;;  %v1682_v14 = vld [vmem:[%s1815_s24 + $0x40] sm:$0xff] (!%p1408_p7)   ;;  %v1685_v16 = vld [vmem:[%s2041_s1 + $0x8] sm:$0xff] (!%p1408_p7)  }
  0x17   : > { %1535 = vmatpush3.bf16.msra.mxu0 (!%p1408_p7), %v1670_v2  ;;  %v1684_v15 = vld [vmem:[%s2041_s1] sm:$0xff] (!%p1408_p7)   ;;  %v1683_v18 = vld [vmem:[%s1815_s24 + $0x48] sm:$0xff] (!%p1408_p7)   ;;  %v1686_v19 = vld [vmem:[%s1815_s24 + $0x50] sm:$0xff] (!%p1408_p7)  }
  0x18   : > { %1547 = vmatpush3.bf16.msra.mxu1 (!%p1408_p7), %v1671_v3  ;;  %1556 = vmatprep.subr.bf16.mxu0 (!%p1408_p7), %v1678_v9  ;;  %v1688_v17 = vld [vmem:[%s1815_s24 + $0x60] sm:$0xff] (!%p1408_p7)   ;;  %v1689_v20 = vld [vmem:[%s1815_s24 + $0x68] sm:$0xff] (!%p1408_p7)   ;;  %v1690_v21 = vld [vmem:[%s1815_s24 + $0x70] sm:$0xff] (!%p1408_p7)  }
  0x19   : > { %1568 = vmatprep.subr.bf16.mxu1 (!%p1408_p7), %v1684_v15  ;;  %v1687_v22 = vld [vmem:[%s1815_s24 + $0x58] sm:$0xff] (!%p1408_p7)  }
  0x1a   : > { %1537 = vmatmul.mubr.msk.bf16.vlgmr.msra.gmra.mrb[0].mxu0 %vm243_vm0, %v1674_v6  ;;  %v1691_v23 = vld [vmem:[%s1815_s24 + $0x78] sm:$0xff]  }
  0x1b   : > { %1549 = vmatmul.mubr.msk.bf16.vlgmr.msra.gmra.mrb[0].mxu1 %vm243_vm0, %v1675_v7  ;;  %1540 = vmatprep.mubr.msk.bf16.mxu0 %vm243_vm0, %v1676_v8 }
  0x1c   : > { %1557 = vmatpush3.bf16.msra.mxu0 %v1678_v9  ;;  %1552 = vmatprep.mubr.msk.bf16.mxu1 %vm243_vm0, %v1679_v10 }
  0x1d   : > { %1558 = vmatprep.subr.bf16.mxu0 %v1681_v12  ;;  %1569 = vmatpush3.bf16.msra.mxu1 %v1684_v15 }
  0x1e   : > { %1570 = vmatprep.subr.bf16.mxu1 %v1685_v16 }
  0x20   : > { %1559 = vmatpush3.bf16.msra.mxu0 %v1681_v12 }
  0x21   : > { %1571 = vmatpush3.bf16.msra.mxu1 %v1685_v16 }
  0x22   : > { %1541 = vmatmul.mubr.msk.bf16.gmra.mrb[4].mxu0 %vm243_vm0, %v1677_v11 }
  0x23   : > { %1553 = vmatmul.mubr.msk.bf16.gmra.mrb[4].mxu1 %vm243_vm0, %v1680_v13  ;;  %1560 = vmatprep.mubr.msk.bf16.mxu0 %vm243_vm0, %v1682_v14 }
  0x24   : > { %1572 = vmatprep.mubr.msk.bf16.mxu1 %vm243_vm0, %v1688_v17 }
  0x2a   : > { %1561 = vmatmul.mubr.msk.bf16.vlgmr.msra.gmra.mrb[8].mxu0 %vm243_vm0, %v1683_v18 }
  0x2b   : > { %1564 = vmatprep.mubr.msk.bf16.mxu0 %vm243_vm0, %v1686_v19  ;;  %1573 = vmatmul.mubr.msk.bf16.vlgmr.msra.gmra.mrb[8].mxu1 %vm243_vm0, %v1689_v20 }
  0x2c   : > { %1576 = vmatprep.mubr.msk.bf16.mxu1 %vm243_vm0, %v1690_v21 }
  0x32   : > { %1565 = vmatmul.mubr.msk.bf16.gmra.mrb[12].mxu0 %vm243_vm0, %v1687_v22 }
  0x33   : > { %1577 = vmatmul.mubr.msk.bf16.gmra.mrb[12].mxu1 %vm243_vm0, %v1691_v23 }
  0xed   : > { %v1538_v24 = vpop.f32.mrb[0].mxu0 }
  0xee   : > { %v1550_v25 = vpop.f32.mrb[0].mxu1  ;;  %v290_v26 = vpop.f32.mrb[1].mxu0 }
  0xef   : > { %v457_v27 = vpop.f32.mrb[1].mxu1  ;;  %v1539_v28 = vpop.f32.mrb[2].mxu0 }
  0xf0   : > { %v322_v29 = vpack.c.bf16 %v1539_v28, %v1538_v24  ;;  %v1551_v30 = vpop.f32.mrb[2].mxu1  ;;  %v293_v31 = vpop.f32.mrb[3].mxu0 }
  0xf1   : > { %v489_v32 = vpack.c.bf16 %v1551_v30, %v1550_v25  ;;  %v321_v33 = vpack.c.bf16 %v293_v31, %v290_v26  ;;  %v460_v34 = vpop.f32.mrb[3].mxu1 }
  0xf2   : > { %348 = vst.msk [vmem:[#allocation4 + $0x8] sm:$0xff] %vm346_vm1, %v322_v29  ;;  %v488_v35 = vpack.c.bf16 %v460_v34, %v457_v27  ;;  %353 = vrot.lane.b32.xlu0 %v322_v29, %s1757_s26 }
  0xf3   : > { %347 = vst.msk [vmem:[#allocation4] sm:$0xff] %vm346_vm1, %v321_v33  ;;  %530 = vrot.lane.b32.xlu1 %v489_v32, %s1757_s26 }
  0xf5   : > { %v1542_v36 = vpop.f32.mrb[4].mxu0 }
  0xf6   : > { %351 = vrot.lane.b32.xlu0 %v321_v33, %s1757_s26  ;;  %v306_v37 = vpop.f32.mrb[5].mxu0  ;;  %v1554_v38 = vpop.f32.mrb[4].mxu1 }
  0xf7   : > { %331 = vrot.lane.b32.xlu1 %v322_v29, %s1758_s27  ;;  %v1543_v39 = vpop.f32.mrb[6].mxu0  ;;  %v473_v40 = vpop.f32.mrb[5].mxu1 }
  0xf8   : > { %v324_v41 = vpack.c.bf16 %v1543_v39, %v1542_v36  ;;  %v309_v42 = vpop.f32.mrb[7].mxu0  ;;  %v1555_v43 = vpop.f32.mrb[6].mxu1 }
  0xf9   : > { %v513_v44 = vld [vmem:[#allocation4 + $0x8] sm:$0xff]  ;;  %v1885_v45 = vpack.c.bf16 %v309_v42, %v306_v37  ;;  %v491_v46 = vpack.c.bf16 %v1555_v43, %v1554_v38  ;;  %v476_v47 = vpop.f32.mrb[7].mxu1 }
  0xfa   : > { %v517_v48 = vmax.bf16 %v513_v44, %v489_v32  ;;  %v512_v49 = vld [vmem:[#allocation4] sm:$0xff]  ;;  %350 = vst.msk [vmem:[#allocation4 + $0x18] sm:$0xff] %vm346_vm1, %v324_v41  ;;  %528 = vrot.lane.b32.xlu0 %v488_v35, %s1757_s26  ;;  %v490_v50 = vpack.c.bf16 %v476_v47, %v473_v40 }
  0xfb   : > { %v516_v51 = vmax.bf16 %v512_v49, %v488_v35  ;;  %349 = vst.msk [vmem:[#allocation4 + $0x10] sm:$0xff] %vm346_vm1, %v1885_v45  ;;  %498 = vrot.lane.b32.xlu1 %v489_v32, %s1758_s27 }
  0xfc   : > { %521 = vst.msk [vmem:[#allocation4 + $0x8] sm:$0xff] %vm346_vm1, %v517_v48 }
  0xfd   : > { %520 = vst.msk [vmem:[#allocation4] sm:$0xff] %vm346_vm1, %v516_v51  ;;  %v1562_v52 = vpop.f32.mrb[8].mxu0 }
  0xfe   : > { %329 = vrot.lane.b32.xlu0 %v321_v33, %s1758_s27  ;;  %v638_v53 = vpop.f32.mrb[9].mxu0  ;;  %v1574_v54 = vpop.f32.mrb[8].mxu1 }
  0xff   : > { %357 = vrot.lane.b32.xlu1 %v324_v41, %s1757_s26  ;;  %v1563_v55 = vpop.f32.mrb[10].mxu0  ;;  %v819_v56 = vpop.f32.mrb[9].mxu1 }
 0x100   : > { %v670_v57 = vpack.c.bf16 %v1563_v55, %v1562_v52  ;;  %v641_v58 = vpop.f32.mrb[11].mxu0  ;;  %v1575_v59 = vpop.f32.mrb[10].mxu1 }
 0x101   : > { %v515_v60 = vld [vmem:[#allocation4 + $0x18] sm:$0xff]  ;;  %v669_v61 = vpack.c.bf16 %v641_v58, %v638_v53  ;;  %v851_v62 = vpack.c.bf16 %v1575_v59, %v1574_v54  ;;  %v822_v63 = vpop.f32.mrb[11].mxu1 }
 0x102   : > { %v519_v0 = vmax.bf16 %v515_v60, %v491_v46  ;;  %v514_v1 = vld [vmem:[#allocation4 + $0x10] sm:$0xff]  ;;  %496 = vrot.lane.b32.xlu0 %v488_v35, %s1758_s27  ;;  %v850_v2 = vpack.c.bf16 %v822_v63, %v819_v56 }
 0x103   : > { %v518_v3 = vmax.bf16 %v514_v1, %v490_v50  ;;  %v694_v4 = vld [vmem:[#allocation4 + $0x8] sm:$0xff]  ;;  %534 = vrot.lane.b32.xlu1 %v491_v46, %s1757_s26 }
 0x104   : > { %523 = vst.msk [vmem:[#allocation4 + $0x18] sm:$0xff] %vm346_vm1, %v519_v0  ;;  %v698_v5 = vmax.bf16 %v694_v4, %v670_v57  ;;  %v693_v6 = vld [vmem:[#allocation4] sm:$0xff] }
 0x105   : > { %522 = vst.msk [vmem:[#allocation4 + $0x10] sm:$0xff] %vm346_vm1, %v518_v3  ;;  %v697_v7 = vmax.bf16 %v693_v6, %v669_v61  ;;  %v1566_v8 = vpop.f32.mrb[12].mxu0 }
 0x106   : > { %702 = vst.msk [vmem:[#allocation4 + $0x8] sm:$0xff] %vm346_vm1, %v698_v5  ;;  %532 = vrot.lane.b32.xlu0 %v490_v50, %s1757_s26  ;;  %v654_v9 = vpop.f32.mrb[13].mxu0  ;;  %v1578_v10 = vpop.f32.mrb[12].mxu1 }
 0x107   : > { %701 = vst.msk [vmem:[#allocation4] sm:$0xff] %vm346_vm1, %v697_v7  ;;  %335 = vrot.lane.b32.xlu1 %v324_v41, %s1758_s27  ;;  %v1567_v11 = vpop.f32.mrb[14].mxu0  ;;  %v835_v12 = vpop.f32.mrb[13].mxu1 }
 0x108   : > { %v672_v13 = vpack.c.bf16 %v1567_v11, %v1566_v8  ;;  %v657_v14 = vpop.f32.mrb[15].mxu0  ;;  %v1579_v15 = vpop.f32.mrb[14].mxu1 }
 0x109   : > { %v671_v16 = vpack.c.bf16 %v657_v14, %v654_v9  ;;  %v853_v17 = vpack.c.bf16 %v1579_v15, %v1578_v10  ;;  %v838_v18 = vpop.f32.mrb[15].mxu1 }
 0x10a   : > { %333 = vrot.lane.b32.xlu0 %v1885_v45, %s1758_s27  ;;  %v852_v19 = vpack.c.bf16 %v838_v18, %v835_v12 }
 0x10b   : > { %v696_v20 = vld [vmem:[#allocation4 + $0x18] sm:$0xff]  ;;  %502 = vrot.lane.b32.xlu1 %v491_v46, %s1758_s27 }
 0x10c   : > { %v700_v21 = vmax.bf16 %v696_v20, %v672_v13  ;;  %v695_v22 = vld [vmem:[#allocation4 + $0x10] sm:$0xff] }
 0x10d   : > { %v699_v23 = vmax.bf16 %v695_v22, %v671_v16  ;;  %v875_v24 = vld [vmem:[#allocation4 + $0x8] sm:$0xff] }
 0x10e   : > { %704 = vst.msk [vmem:[#allocation4 + $0x18] sm:$0xff] %vm346_vm1, %v700_v21  ;;  %v879_v25 = vmax.bf16 %v875_v24, %v851_v62  ;;  %v874_v26 = vld [vmem:[#allocation4] sm:$0xff]  ;;  %500 = vrot.lane.b32.xlu0 %v490_v50, %s1758_s27 }
 0x10f   : > { %703 = vst.msk [vmem:[#allocation4 + $0x10] sm:$0xff] %vm346_vm1, %v699_v23  ;;  %v878_v27 = vmax.bf16 %v874_v26, %v850_v2  ;;  %355 = vrot.lane.b32.xlu1 %v1885_v45, %s1757_s26 }
 0x110   : > { %883 = vst.msk [vmem:[#allocation4 + $0x8] sm:$0xff] %vm346_vm1, %v879_v25 }
 0x111   : > { %882 = vst.msk [vmem:[#allocation4] sm:$0xff] %vm346_vm1, %v878_v27 }
 0x112   : > { %709 = vrot.lane.b32.xlu0 %v669_v61, %s1757_s26 }
 0x113   : > { %711 = vrot.lane.b32.xlu1 %v670_v57, %s1757_s26 }
 0x115   : > { %v877_v28 = vld [vmem:[#allocation4 + $0x18] sm:$0xff] }
 0x116   : > { %v881_v29 = vmax.bf16 %v877_v28, %v853_v17  ;;  %v876_v30 = vld [vmem:[#allocation4 + $0x10] sm:$0xff]  ;;  %890 = vrot.lane.b32.xlu0 %v850_v2, %s1757_s26 }
 0x117   : > { %v880_v31 = vmax.bf16 %v876_v30, %v852_v19  ;;  %892 = vrot.lane.b32.xlu1 %v851_v62, %s1757_s26 }
 0x118   : > { %885 = vst.msk [vmem:[#allocation4 + $0x18] sm:$0xff] %vm346_vm1, %v881_v29 }
 0x119   : > { %884 = vst.msk [vmem:[#allocation4 + $0x10] sm:$0xff] %vm346_vm1, %v880_v31 }
 0x11a   : > { %677 = vrot.lane.b32.xlu0 %v669_v61, %s1758_s27 }
 0x11b   : > { %679 = vrot.lane.b32.xlu1 %v670_v57, %s1758_s27 }
 0x11e   : > { %858 = vrot.lane.b32.xlu0 %v850_v2, %s1758_s27 }
 0x11f   : > { %860 = vrot.lane.b32.xlu1 %v851_v62, %s1758_s27 }
 0x122   : > { %713 = vrot.lane.b32.xlu0 %v671_v16, %s1757_s26 }
 0x123   : > { %715 = vrot.lane.b32.xlu1 %v672_v13, %s1757_s26 }
 0x126   : > { %894 = vrot.lane.b32.xlu0 %v852_v19, %s1757_s26 }
 0x127   : > { %896 = vrot.lane.b32.xlu1 %v853_v17, %s1757_s26 }
 0x12a   : > { %681 = vrot.lane.b32.xlu0 %v671_v16, %s1758_s27 }
 0x12b   : > { %683 = vrot.lane.b32.xlu1 %v672_v13, %s1758_s27 }
 0x12e   : > { %862 = vrot.lane.b32.xlu0 %v852_v19, %s1758_s27 }
 0x12f   : > { %864 = vrot.lane.b32.xlu1 %v853_v17, %s1758_s27 }
 0x164   : > { %v354_v32 = vpop.permute.xlu0 %353 }
 0x165   : > { %v531_v33 = vpop.permute.xlu1 %530  ;;  %364 = vst.msk [vmem:[#allocation3 + $0x8] sm:$0xff] %vm341_vm2, %v354_v32 }
 0x168   : > { %v352_v34 = vpop.permute.xlu0 %351 }
 0x169   : > { %v332_v35 = vpop.permute.xlu1 %331  ;;  %363 = vst.msk [vmem:[#allocation3] sm:$0xff] %vm341_vm2, %v352_v34 }
 0x16a   : > { %343 = vst.msk [vmem:[#allocation2 + $0x8] sm:$0xff] %vm341_vm2, %v332_v35 }
 0x16c   : > { %v525_v36 = vld [vmem:[#allocation3 + $0x8] sm:$0xff]  ;;  %v529_v37 = vpop.permute.xlu0 %528 }
 0x16d   : > { %v541_v38 = vmax.bf16 %v531_v33, %v525_v36  ;;  %v499_v39 = vpop.permute.xlu1 %498 }
 0x16e   : > { %509 = vst.msk [vmem:[#allocation2 + $0x28] sm:$0xff] %vm341_vm2, %v499_v39 }
 0x16f   : > { %545 = vst.msk [vmem:[#allocation3 + $0x8] sm:$0xff] %vm341_vm2, %v541_v38 }
 0x170   : > { %v524_v40 = vld [vmem:[#allocation3] sm:$0xff]  ;;  %v330_v41 = vpop.permute.xlu0 %329 }
 0x171   : > { %v540_v42 = vmax.bf16 %v529_v37, %v524_v40  ;;  %342 = vst.msk [vmem:[#allocation2] sm:$0xff] %vm341_vm2, %v330_v41  ;;  %v358_v43 = vpop.permute.xlu1 %357 }
 0x172   : > { %366 = vst.msk [vmem:[#allocation3 + $0x18] sm:$0xff] %vm341_vm2, %v358_v43 }
 0x173   : > { %544 = vst.msk [vmem:[#allocation3] sm:$0xff] %vm341_vm2, %v540_v42 }
 0x174   : > { %v497_v44 = vpop.permute.xlu0 %496 }
 0x175   : > { %508 = vst.msk [vmem:[#allocation2 + $0x20] sm:$0xff] %vm341_vm2, %v497_v44  ;;  %v535_v45 = vpop.permute.xlu1 %534 }
 0x176   : > { %v706_v57 = vld [vmem:[#allocation3 + $0x8] sm:$0xff] }
 0x178   : > { %v533_v46 = vpop.permute.xlu0 %532 }
 0x179   : > { %v527_v47 = vld [vmem:[#allocation3 + $0x18] sm:$0xff]  ;;  %v336_v48 = vpop.permute.xlu1 %335 }
 0x17a   : > { %v543_v49 = vmax.bf16 %v535_v45, %v527_v47  ;;  %345 = vst.msk [vmem:[#allocation2 + $0x18] sm:$0xff] %vm341_vm2, %v336_v48  ;;  %v705_v54 = vld [vmem:[#allocation3] sm:$0xff] }
 0x17c   : > { %547 = vst.msk [vmem:[#allocation3 + $0x18] sm:$0xff] %vm341_vm2, %v543_v49  ;;  %v334_v50 = vpop.permute.xlu0 %333 }
 0x17d   : > { %v503_v51 = vpop.permute.xlu1 %502  ;;  %344 = vst.msk [vmem:[#allocation2 + $0x10] sm:$0xff] %vm341_vm2, %v334_v50 }
 0x17e   : > { %511 = vst.msk [vmem:[#allocation2 + $0x38] sm:$0xff] %vm341_vm2, %v503_v51 }
 0x180   : > { %v501_v52 = vpop.permute.xlu0 %500 }
 0x181   : > { %510 = vst.msk [vmem:[#allocation2 + $0x30] sm:$0xff] %vm341_vm2, %v501_v52  ;;  %v356_v53 = vpop.permute.xlu1 %355 }
 0x182   : > { %365 = vst.msk [vmem:[#allocation3 + $0x10] sm:$0xff] %vm341_vm2, %v356_v53 }
 0x183   : > { %v708_v11 = vld [vmem:[#allocation3 + $0x18] sm:$0xff] }
 0x184   : > { %v710_v55 = vpop.permute.xlu0 %709 }
 0x185   : > { %v721_v56 = vmax.bf16 %v710_v55, %v705_v54  ;;  %v712_v58 = vpop.permute.xlu1 %711 }
 0x186   : > { %v722_v59 = vmax.bf16 %v712_v58, %v706_v57 }
 0x187   : > { %725 = vst.msk [vmem:[#allocation3] sm:$0xff] %vm341_vm2, %v721_v56 }
 0x188   : > { %726 = vst.msk [vmem:[#allocation3 + $0x8] sm:$0xff] %vm341_vm2, %v722_v59  ;;  %v891_v60 = vpop.permute.xlu0 %890 }
 0x189   : > { %v526_v61 = vld [vmem:[#allocation3 + $0x10] sm:$0xff]  ;;  %v893_v62 = vpop.permute.xlu1 %892 }
 0x18a   : > { %v542_v63 = vmax.bf16 %v533_v46, %v526_v61 }
 0x18c   : > { %546 = vst.msk [vmem:[#allocation3 + $0x10] sm:$0xff] %vm341_vm2, %v542_v63  ;;  %v678_v0 = vpop.permute.xlu0 %677 }
 0x18d   : > { %689 = vst.msk [vmem:[#allocation2 + $0x40] sm:$0xff] %vm341_vm2, %v678_v0  ;;  %v680_v1 = vpop.permute.xlu1 %679 }
 0x18e   : > { %v886_v2 = vld [vmem:[#allocation3] sm:$0xff]  ;;  %690 = vst.msk [vmem:[#allocation2 + $0x48] sm:$0xff] %vm341_vm2, %v680_v1 }
 0x18f   : > { %v902_v3 = vmax.bf16 %v891_v60, %v886_v2  ;;  %v887_v4 = vld [vmem:[#allocation3 + $0x8] sm:$0xff] }
 0x190   : > { %v903_v5 = vmax.bf16 %v893_v62, %v887_v4  ;;  %v859_v6 = vpop.permute.xlu0 %858 }
 0x191   : > { %906 = vst.msk [vmem:[#allocation3] sm:$0xff] %vm341_vm2, %v902_v3  ;;  %870 = vst.msk [vmem:[#allocation2 + $0x60] sm:$0xff] %vm341_vm2, %v859_v6  ;;  %v861_v7 = vpop.permute.xlu1 %860 }
 0x192   : > { %907 = vst.msk [vmem:[#allocation3 + $0x8] sm:$0xff] %vm341_vm2, %v903_v5  ;;  %871 = vst.msk [vmem:[#allocation2 + $0x68] sm:$0xff] %vm341_vm2, %v861_v7 }
 0x193   : > { %v707_v9 = vld [vmem:[#allocation3 + $0x10] sm:$0xff] }
 0x194   : > { %v714_v8 = vpop.permute.xlu0 %713 }
 0x195   : > { %v723_v10 = vmax.bf16 %v714_v8, %v707_v9  ;;  %v716_v12 = vpop.permute.xlu1 %715 }
 0x196   : > { %v724_v13 = vmax.bf16 %v716_v12, %v708_v11 }
 0x197   : > { %727 = vst.msk [vmem:[#allocation3 + $0x10] sm:$0xff] %vm341_vm2, %v723_v10 }
 0x198   : > { %728 = vst.msk [vmem:[#allocation3 + $0x18] sm:$0xff] %vm341_vm2, %v724_v13  ;;  %v895_v14 = vpop.permute.xlu0 %894 }
 0x199   : > { %v897_v15 = vpop.permute.xlu1 %896 }
 0x19c   : > { %v682_v16 = vpop.permute.xlu0 %681 }
 0x19d   : > { %691 = vst.msk [vmem:[#allocation2 + $0x50] sm:$0xff] %vm341_vm2, %v682_v16  ;;  %v684_v17 = vpop.permute.xlu1 %683 }
 0x19e   : > { %v888_v18 = vld [vmem:[#allocation3 + $0x10] sm:$0xff]  ;;  %692 = vst.msk [vmem:[#allocation2 + $0x58] sm:$0xff] %vm341_vm2, %v684_v17 }
 0x19f   : > { %v904_v19 = vmax.bf16 %v895_v14, %v888_v18  ;;  %v889_v20 = vld [vmem:[#allocation3 + $0x18] sm:$0xff] }
 0x1a0   : > { %v905_v21 = vmax.bf16 %v897_v15, %v889_v20  ;;  %v863_v22 = vpop.permute.xlu0 %862 }
 0x1a1   : > { %908 = vst.msk [vmem:[#allocation3 + $0x10] sm:$0xff] %vm341_vm2, %v904_v19  ;;  %872 = vst.msk [vmem:[#allocation2 + $0x70] sm:$0xff] %vm341_vm2, %v863_v22  ;;  %v865_v23 = vpop.permute.xlu1 %864 }
 0x1a2   : > { %909 = vst.msk [vmem:[#allocation3 + $0x18] sm:$0xff] %vm341_vm2, %v905_v21  ;;  %873 = vst.msk [vmem:[#allocation2 + $0x78] sm:$0xff] %vm341_vm2, %v865_v23 }
 0x1a3 PF: > { %v919_v24 = vld [vmem:[#allocation3] sm:$0xff]  ;;  %vm923_vm3 = vcmask 31744   ;;  %v920_v25 = vld [vmem:[#allocation3 + $0x8] sm:$0xff]  ;;  %s1449_s28 = sshll.u32 %s1739_s12, 6  ;;  %vm1013_vm4 = vcmask 523264   ;;  %v1096_v54 = vld [vmem:[#allocation4 + $0x10] sm:$0xff] }
 0x1a4   : > { %1622 = vmatprep.subr.msk.bf16.mxu0 %vm923_vm3, %v919_v24  ;;  %v937_v26 = vsel %vm923_vm3, %v919_v24, 0  ;;  %s911_s30 = sshra.s32 %s1449_s28, 4  ;;  %v940_v28 = vsel %vm923_vm3, %v920_v25, 0  ;;  %v1094_v52 = vld [vmem:[#allocation4] sm:$0xff]  ;;  %v1095_v53 = vld [vmem:[#allocation4 + $0x8] sm:$0xff]  ;;  %v1097_v55 = vld [vmem:[#allocation4 + $0x18] sm:$0xff] }
 0x1a5   : > { %1581 = vmatpush3.bf16.xpose.msra.mxu0 %v937_v26  ;;  %s1450_s4 = sshll.u32 %s911_s30, 3  ;;  %1596 = vmatprep.subr.bf16.mxu1 %v1094_v52  ;;  %vm1223_vm5 = vcmask 130048   ;;  %s1197_s8 = sshra.s32 %s1449_s28, 3  ;;  %vm1301_vm6 = vcmask 261120  }
 0x1a6   : > { %1623 = vmatprep.subr.msk.bf16.mxu0 %vm923_vm3, %v920_v25  ;;  %s914_s5 = scalar_lea.vmem [#allocation2], %s1450_s4  ;;  %1597 = vmatpush3.bf16.msra.mxu1 %v1094_v52  ;;  %s1459_s9 = sshll.u32 %s1197_s8, 2 }
 0x1a7   : > { %1598 = vmatprep.subr.bf16.mxu1 %v1095_v53  ;;  %s1200_s10 = scalar_lea.vmem %s1815_s24, %s1459_s9 }
 0x1a8   : > { %v921_v29 = vld [vmem:[#allocation3 + $0x10] sm:$0xff] }
 0x1a9   : > { %v915_v27 = vld [vmem:[%s914_s5] sm:$0xff]  ;;  %v943_v30 = vsel %vm923_vm3, %v921_v29, 0  ;;  %v922_v31 = vld [vmem:[#allocation3 + $0x18] sm:$0xff]  ;;  %v916_v33 = vld [vmem:[%s914_s5 + $0x8] sm:$0xff] }
 0x1aa   : > { %1588 = vmatprep.mubr.msk.bf16.mxu0 %vm923_vm3, %v915_v27  ;;  %v946_v32 = vsel %vm923_vm3, %v922_v31, 0  ;;  %v917_v34 = vld [vmem:[%s914_s5 + $0x10] sm:$0xff]  ;;  %v918_v35 = vld [vmem:[%s914_s5 + $0x18] sm:$0xff]  ;;  %1599 = vmatpush3.bf16.msra.mxu1 %v1095_v53 }
 0x1ab   : > { %1600 = vmatprep.subr.bf16.mxu1 %v1096_v54 }
 0x1ad   : > { %1583 = vmatpush3.bf16.xpose.msra.mxu0 %v940_v28 }
 0x1ae   : > { %1624 = vmatprep.subr.msk.bf16.mxu0 %vm923_vm3, %v921_v29  ;;  %1601 = vmatpush3.bf16.msra.mxu1 %v1096_v54 }
 0x1af   : > { %1602 = vmatprep.subr.bf16.mxu1 %v1097_v55 }
 0x1b2   : > { %1603 = vmatpush3.bf16.msra.mxu1 %v1097_v55 }
 0x1b5   : > { %1585 = vmatpush3.bf16.xpose.msra.mxu0 %v943_v30 }
 0x1b6   : > { %1625 = vmatprep.subr.msk.bf16.mxu0 %vm923_vm3, %v922_v31 }
 0x1bd   : > { %1587 = vmatpush3.bf16.xpose.msra.mxu0 %v946_v32 }
 0x1c4   : > { %1589 = vmatmul.mubr.msk.bf16.vlgmr.msra.gmra.mrb[0].mxu0 %vm923_vm3, %v916_v33 }
 0x1c5   : > { %1592 = vmatprep.mubr.msk.bf16.mxu0 %vm923_vm3, %v917_v34 }
 0x1cc   : > { %1593 = vmatmul.mubr.msk.bf16.gmra.mrb[4].mxu0 %vm923_vm3, %v918_v35 }
 0x297   : > { %v1590_v36 = vpop.f32.mrb[0].mxu0 }
 0x298   : > { %v982_v37 = vpop.f32.mrb[1].mxu0  ;;  %v1020_v38 = vsel %vm1013_vm4, %v1590_v36, -inf }
 0x299   : > { %1021 = vmax.xlane.f32.xlu1 %v1020_v38  ;;  %v1591_v39 = vpop.f32.mrb[2].mxu0  ;;  %v1014_v40 = vsel %vm1013_vm4, %v982_v37, -inf }
 0x29a   : > { %1015 = vmax.xlane.f32.xlu0 %v1014_v40  ;;  %v985_v41 = vpop.f32.mrb[3].mxu0  ;;  %v1023_v42 = vsel %vm1013_vm4, %v1591_v39, -inf }
 0x29b   : > { %v1017_v43 = vsel %vm1013_vm4, %v985_v41, -inf }
 0x29d   : > { %1024 = vmax.xlane.f32.xlu1 %v1023_v42 }
 0x29e   : > { %1018 = vmax.xlane.f32.xlu0 %v1017_v43 }
 0x29f   : > { %v1594_v44 = vpop.f32.mrb[4].mxu0 }
 0x2a0   : > { %v998_v45 = vpop.f32.mrb[5].mxu0  ;;  %v1032_v50 = vsel %vm1013_vm4, %v1594_v44, -inf }
 0x2a1   : > { %v1595_v46 = vpop.f32.mrb[6].mxu0  ;;  %v1026_v47 = vsel %vm1013_vm4, %v998_v45, -inf }
 0x2a2   : > { %1027 = vmax.xlane.f32.xlu0 %v1026_v47  ;;  %v1001_v48 = vpop.f32.mrb[7].mxu0  ;;  %v1035_v51 = vsel %vm1013_vm4, %v1595_v46, -inf }
 0x2a3   : > { %v1029_v49 = vsel %vm1013_vm4, %v1001_v48, -inf }
 0x2a4   : > { %1030 = vmax.xlane.f32.xlu1 %v1029_v49 }
 0x2a6   : > { %1033 = vmax.xlane.f32.xlu0 %v1032_v50 }
 0x2a8   : > { %1036 = vmax.xlane.f32.xlu1 %v1035_v51 }
 0x326   : > { %v1022_v56 = vpop.xlane.xlu1 %1021 }
 0x327   : > { %v1016_v57 = vpop.xlane.xlu0 %1015  ;;  %v1040_v59 = vsub.f32 %v1590_v36, %v1022_v56  ;;  %v1692_v36 = vld [vmem:[%s2042_s2] sm:$0xff]  }
 0x328   : > { %v1038_v62 = vsub.f32 %v982_v37, %v1016_v57  ;;  %1612 = vmatprep.subr.bf16.mxu1 %v1692_v36 }
 0x32a   : > { %v1025_v58 = vpop.xlane.xlu1 %1024 }
 0x32b   : > { %v1041_v60 = vsub.f32 %v1591_v39, %v1025_v58  ;;  %v1019_v61 = vpop.xlane.xlu0 %1018 }
 0x32c   : > { %v1039_v63 = vsub.f32 %v985_v41, %v1019_v61 }
 0x32d   : > { %v1047_v0 = vpack.c.bf16 %v1041_v60, %v1040_v59 }
 0x32e   : > { %v1046_v1 = vpack.c.bf16 %v1039_v63, %v1038_v62 }
 0x32f   : > { %v1054_v2 = vmul.bf16 1069105081, %v1047_v0  ;;  %v1028_v3 = vpop.xlane.xlu0 %1027 }
 0x330   : > { %v1051_v4 = vmul.bf16 1069105081, %v1046_v1  ;;  %v1042_v6 = vsub.f32 %v998_v45, %v1028_v3 }
 0x331   : > { %1693 = vpow.bf16 %v1054_v2  ;;  %v1031_v5 = vpop.xlane.xlu1 %1030 }
 0x332   : > { %1695 = vpow.bf16 %v1051_v4  ;;  %v1043_v7 = vsub.f32 %v1001_v48, %v1031_v5 }
 0x333   : > { %v1034_v8 = vpop.xlane.xlu0 %1033 }
 0x334   : > { %v1048_v9 = vpack.c.bf16 %v1043_v7, %v1042_v6  ;;  %v1044_v12 = vsub.f32 %v1594_v44, %v1034_v8 }
 0x335   : > { %v1037_v10 = vpop.xlane.xlu1 %1036 }
 0x336   : > { %v1057_v11 = vmul.bf16 1069105081, %v1048_v9  ;;  %v1045_v13 = vsub.f32 %v1595_v46, %v1037_v10  ;;  %v1484_v9 = vld [vmem:[%s1200_s10 + $0x8] sm:$0xff]   ;;  %v1469_v10 = vld [vmem:[%s1200_s10] sm:$0xff]  }
 0x338   : > { %1697 = vpow.bf16 %v1057_v11  ;;  %v1049_v14 = vpack.c.bf16 %v1045_v13, %v1044_v12  ;;  %v1474_v11 = vunpack.c.l.bf16 %v1484_v9  ;;  %v1470_v12 = vunpack.c.l.bf16 %v1469_v10 }
 0x339   : > { %v1475_v13 = vunpack.c.h.bf16 %v1484_v9 }
 0x33a   : > { %v1060_v15 = vmul.bf16 1069105081, %v1049_v14 }
 0x33c   : > { %v1694_v16 = vpop.eup %1693  ;;  %1699 = vpow.bf16 %v1060_v15  ;;  %v1471_v15 = vunpack.c.h.bf16 %v1469_v10 }
 0x33d   : > { %v1696_v17 = vpop.eup %1695  ;;  %v1064_v22 = vunpack.c.l.bf16 %v1694_v16  ;;  %v1065_v23 = vunpack.c.h.bf16 %v1694_v16 }
 0x33e   : > { %1604 = vmatprep.mubr.msk.bf16.mxu1 %vm1013_vm4, %v1696_v17  ;;  %v1062_v18 = vunpack.c.l.bf16 %v1696_v17  ;;  %v1063_v19 = vunpack.c.h.bf16 %v1696_v17 }
 0x33f   : > { %1605 = vmatmul.mubr.msk.bf16.vlgmr.msra.gmra.mrb[0].mxu1 %vm1013_vm4, %v1694_v16  ;;  %v1076_v25 = vsel %vm1013_vm4, %v1064_v22, 0.0  ;;  %v1079_v26 = vsel %vm1013_vm4, %v1065_v23, 0.0  ;;  %v1486_v22 = vld [vmem:[%s1200_s10 + $0x18] sm:$0xff]  }
 0x340   : > { %v1070_v20 = vsel %vm1013_vm4, %v1062_v18, 0.0  ;;  %v1073_v21 = vsel %vm1013_vm4, %v1063_v19, 0.0  ;;  %1613 = vmatpush3.bf16.msra.mxu1 %v1692_v36 }
 0x341   : > { %1071 = vadd.xlane.f32.xlu0 %v1070_v20  ;;  %1074 = vadd.xlane.f32.xlu1 %v1073_v21 }
 0x343   : > { %v1698_v24 = vpop.eup %1697 }
 0x344   : > { %1608 = vmatprep.mubr.msk.bf16.mxu1 %vm1013_vm4, %v1698_v24  ;;  %v1067_v27 = vunpack.c.h.bf16 %v1698_v24  ;;  %v1066_v28 = vunpack.c.l.bf16 %v1698_v24  ;;  %v1485_v24 = vld [vmem:[%s1200_s10 + $0x10] sm:$0xff]  }
 0x345   : > { %1077 = vadd.xlane.f32.xlu0 %v1076_v25  ;;  %1080 = vadd.xlane.f32.xlu1 %v1079_v26  ;;  %v1482_v25 = vunpack.c.l.bf16 %v1486_v22  ;;  %v1478_v26 = vunpack.c.l.bf16 %v1485_v24 }
 0x346   : > { %v1085_v30 = vsel %vm1013_vm4, %v1067_v27, 0.0  ;;  %v1082_v31 = vsel %vm1013_vm4, %v1066_v28, 0.0  ;;  %v1483_v27 = vunpack.c.h.bf16 %v1486_v22 }
 0x347   : > { %v1700_v29 = vpop.eup %1699 }
 0x348   : > { %1609 = vmatmul.mubr.msk.bf16.gmra.mrb[4].mxu1 %vm1013_vm4, %v1700_v29  ;;  %v1069_v32 = vunpack.c.h.bf16 %v1700_v29  ;;  %v1068_v33 = vunpack.c.l.bf16 %v1700_v29  ;;  %v1479_v29 = vunpack.c.h.bf16 %v1485_v24 }
 0x349   : > { %1086 = vadd.xlane.f32.xlu1 %v1085_v30  ;;  %1083 = vadd.xlane.f32.xlu0 %v1082_v31 }
 0x34a   : > { %v1091_v34 = vsel %vm1013_vm4, %v1069_v32, 0.0  ;;  %v1088_v35 = vsel %vm1013_vm4, %v1068_v33, 0.0 }
 0x34d   : > { %1092 = vadd.xlane.f32.xlu1 %v1091_v34  ;;  %1089 = vadd.xlane.f32.xlu0 %v1088_v35 }
 0x3ce   : > { %v1072_v37 = vpop.xlane.xlu0 %1071  ;;  %v1075_v38 = vpop.xlane.xlu1 %1074 }
 0x3cf   : > { %1701 = vrcp.f32 %v1072_v37 }
 0x3d2   : > { %v1078_v39 = vpop.xlane.xlu0 %1077  ;;  %v1081_v40 = vpop.xlane.xlu1 %1080 }
 0x3d3   : > { %1703 = vrcp.f32 %v1078_v39 }
 0x3d4   : > { %1705 = vrcp.f32 %v1081_v40 }
 0x3d5   : > { %1707 = vrcp.f32 %v1075_v38 }
 0x3d6   : > { %v1084_v41 = vpop.xlane.xlu0 %1083  ;;  %v1087_v42 = vpop.xlane.xlu1 %1086 }
 0x3d7   : > { %1709 = vrcp.f32 %v1084_v41 }
 0x3d9   : > { %v1702_v45 = vpop.eup %1701 }
 0x3da   : > { %v1090_v43 = vpop.xlane.xlu0 %1089  ;;  %v1093_v44 = vpop.xlane.xlu1 %1092 }
 0x3db   : > { %1711 = vrcp.f32 %v1090_v43 }
 0x3dc   : > { %1713 = vrcp.f32 %v1093_v44 }
 0x3dd   : > { %v1704_v47 = vpop.eup %1703  ;;  %1715 = vrcp.f32 %v1087_v42 }
 0x3de   : > { %v1706_v49 = vpop.eup %1705 }
 0x3df   : > { %v1708_v51 = vpop.eup %1707 }
 0x3e1   : > { %v1710_v59 = vpop.eup %1709 }
 0x3e5   : > { %v1712_v61 = vpop.eup %1711 }
 0x3e6   : > { %v1714_v63 = vpop.eup %1713 }
 0x3e7   : > { %v1716_v1 = vpop.eup %1715 }
 0x412   : > { %v1606_v46 = vpop.f32.mrb[0].mxu1 }
 0x413   : > { %v1144_v48 = vpop.f32.mrb[1].mxu1  ;;  %v1185_v52 = vmul.f32 %v1704_v47, %v1606_v46 }
 0x414   : > { %v1607_v50 = vpop.f32.mrb[2].mxu1  ;;  %v1183_v55 = vmul.f32 %v1702_v45, %v1144_v48 }
 0x415   : > { %v1186_v53 = vmul.f32 %v1706_v49, %v1607_v50  ;;  %v1147_v54 = vpop.f32.mrb[3].mxu1 }
 0x416   : > { %v1184_v56 = vmul.f32 %v1708_v51, %v1147_v54 }
 0x417   : > { %v1192_v57 = vpack.c.bf16 %v1186_v53, %v1185_v52 }
 0x418   : > { %v1191_v58 = vpack.c.bf16 %v1184_v56, %v1183_v55 }
 0x41a   : > { %1614 = vmatprep.mubr.msk.bf16.mxu1 %vm1223_vm5, %v1191_v58 }
 0x41b   : > { %v1610_v60 = vpop.f32.mrb[4].mxu1  ;;  %1615 = vmatmul.mubr.msk.bf16.vlgmr.msra.gmra.mrb[8].mxu1 %vm1223_vm5, %v1192_v57 }
 0x41c   : > { %v1160_v62 = vpop.f32.mrb[5].mxu1  ;;  %v1189_v2 = vmul.f32 %v1712_v61, %v1610_v60 }
 0x41d   : > { %v1611_v0 = vpop.f32.mrb[6].mxu1  ;;  %v1187_v5 = vmul.f32 %v1710_v59, %v1160_v62 }
 0x41e   : > { %v1190_v3 = vmul.f32 %v1714_v63, %v1611_v0  ;;  %v1163_v4 = vpop.f32.mrb[7].mxu1 }
 0x41f   : > { %v1188_v6 = vmul.f32 %v1716_v1, %v1163_v4 }
 0x420   : > { %v1194_v7 = vpack.c.bf16 %v1190_v3, %v1189_v2 }
 0x421   : > { %v1193_v8 = vpack.c.bf16 %v1188_v6, %v1187_v5 }
 0x423   : > { %1618 = vmatprep.mubr.msk.bf16.mxu1 %vm1223_vm5, %v1193_v8 }
 0x424   : > { %1619 = vmatmul.mubr.msk.bf16.gmra.mrb[12].mxu1 %vm1223_vm5, %v1194_v7 }
 0x4ee   : > { %v1616_v14 = vpop.f32.mrb[8].mxu1 }
 0x4ef   : > { %v1279_v16 = vadd.f32 %v1616_v14, %v1474_v11  ;;  %v1270_v17 = vpop.f32.mrb[9].mxu1 }
 0x4f0   : > { %v1271_v18 = vadd.f32 %v1470_v12, %v1270_v17  ;;  %v1617_v19 = vpop.f32.mrb[10].mxu1 }
 0x4f1   : > { %1304 = vst.msk [vmem:[%s1820_s29 + $0x10] sm:$0xff] %vm1301_vm6, %v1279_v16  ;;  %v1282_v20 = vadd.f32 %v1617_v19, %v1475_v13  ;;  %v1273_v21 = vpop.f32.mrb[11].mxu1 }
 0x4f2   : > { %1302 = vst.msk [vmem:[%s1820_s29] sm:$0xff] %vm1301_vm6, %v1271_v18  ;;  %v1274_v23 = vadd.f32 %v1471_v15, %v1273_v21 }
 0x4f3   : > { %1305 = vst.msk [vmem:[%s1820_s29 + $0x18] sm:$0xff] %vm1301_vm6, %v1282_v20 }
 0x4f4   : > { %1303 = vst.msk [vmem:[%s1820_s29 + $0x8] sm:$0xff] %vm1301_vm6, %v1274_v23 }
 0x4f7   : > { %v1620_v28 = vpop.f32.mrb[12].mxu1 }
 0x4f8   : > { %v1295_v30 = vadd.f32 %v1620_v28, %v1482_v25  ;;  %v1286_v31 = vpop.f32.mrb[13].mxu1 }
 0x4f9   : > { %v1287_v32 = vadd.f32 %v1478_v26, %v1286_v31  ;;  %v1621_v33 = vpop.f32.mrb[14].mxu1 }
 0x4fa   : > { %1308 = vst.msk [vmem:[%s1820_s29 + $0x30] sm:$0xff] %vm1301_vm6, %v1295_v30  ;;  %v1298_v34 = vadd.f32 %v1621_v33, %v1483_v27  ;;  %v1289_v35 = vpop.f32.mrb[15].mxu1 }
 0x4fb   : > { %1306 = vst.msk [vmem:[%s1820_s29 + $0x20] sm:$0xff] %vm1301_vm6, %v1287_v32  ;;  %v1290_v36 = vadd.f32 %v1479_v29, %v1289_v35 }
 0x4fc   : > { %1309 = vst.msk [vmem:[%s1820_s29 + $0x38] sm:$0xff] %vm1301_vm6, %v1298_v34 }
 0x4fd   : > { %1307 = vst.msk [vmem:[%s1820_s29 + $0x28] sm:$0xff] %vm1301_vm6, %v1290_v36 }
 0x4fe PF: > { %s13_s16 = sadd.s32 1, %s1755_s16   ;;  %s2044_s12 = smov %s1747_s14 }
 0x4ff   : > { %p10_p8 = scmp.ge.s32.totalorder %s13_s16, 10   ;;  %s2045_s13 = smov %s1751_s15 }
 0x500   : > { %s2046_s14 = smov %s2049_s17  ;;  %s2047_s15 = smov %s2053_s18 }
 0x501   :  { %12 = sbr.rel (!%p10_p8) target bundleno = 3 (0x3), region = 68 }

</bundles_post_ra>
